<compile_context>
chip_gen: v7x
topology: tpu7x:2x2x1
jax: 0.10.0
libtpu: 0.0.40
codegen_flags: <defaults>
</compile_context>

<pallas_src>
import functools

import jax
import jax.numpy as jnp
from jax import lax
from jax.experimental import pallas as pl
from jax.experimental.pallas import tpu as pltpu


def _round_up(x, m):
    return ((x + m - 1) // m) * m


def _make_kernel(C_in_pad, K, TL, stride, dilation):
    def kernel(xw_ref, w_ref, bias_ref, o_ref, rhs_ref):
        # xw_ref:   (C_in_pad, W)        bf16 padded input window for this tile
        # w_ref:    (C_out, K*C_in_pad)  bf16 BN-scale-folded weight
        # bias_ref: (C_out, 1)           f32 folded eval-mode BatchNorm bias
        # o_ref:    (C_out, TL)          f32 output tile (lane dim 128-aligned)
        # rhs_ref:  (K*C_in_pad, TL)     bf16 im2col tile scratch
        #
        # im2col build: K static, sublane-aligned, full-width stores.
        for k in range(K):                       # K is small -> static unroll
            if stride == 1:
                tap = xw_ref[:, pl.ds(k * dilation, TL)]
            else:
                # TODO(synk): strided lane read; untested (not exercised below)
                # and may lower slowly in Mosaic.
                tap = xw_ref[:, pl.ds(k * dilation, TL, stride)]
            rhs_ref[pl.ds(k * C_in_pad, C_in_pad), :] = tap

        # ONE bf16 MXU matmul over the full folded contraction (K*C_in_pad).
        acc = jnp.dot(w_ref[...], rhs_ref[...],
                      preferred_element_type=jnp.float32)        # (C_out, TL)
        o_ref[...] = jnp.maximum(acc + bias_ref[...], 0.0).astype(o_ref.dtype)

    return kernel


@functools.partial(jax.jit,
                   static_argnames=("stride", "padding", "dilation", "mxu_dtype"))
def basic_conv1d(x, weight, gamma, beta, running_mean, running_var, *,
                 stride=1, padding=0, dilation=1, eps=1e-5,
                 mxu_dtype=jnp.bfloat16):
    N, C_in, L = x.shape
    C_out, C_in_w, K = weight.shape
    assert C_in == C_in_w, "groups != 1 not supported"
    L_out = (L + 2 * padding - dilation * (K - 1) - 1) // stride + 1
    assert L_out > 0

    ib = jnp.dtype(mxu_dtype).itemsize
    sublane = 8 * (4 // ib)                      # 8 for f32, 16 for bf16
    C_in_pad = _round_up(C_in, sublane)          # aligned, zero-padded channels
    KC = K * C_in_pad                            # folded contraction depth

    # --- choose the lane tile TL (multiple of 128) under a VMEM budget -------
    def geom(tl):
        n_lt = -(-L_out // tl)
        l_out_pad = n_lt * tl
        w_win = (tl - 1) * stride + dilation * (K - 1) + 1      # per-tile window
        l_x = max((l_out_pad - 1) * stride + dilation * (K - 1) + 1,
                  L + padding)                                   # padded x length
        vmem = (2 * C_in_pad * w_win * ib        # double-buffered input window
                + 2 * C_out * tl * 4             # double-buffered output tile
                + 2 * C_out * KC * ib            # resident folded weight
                + KC * tl * ib                   # im2col scratch
                + 2 * C_out * 4)                 # bias
        return n_lt, l_out_pad, w_win, l_x, vmem

    TL = min(1024, _round_up(L_out, 128))
    n_lt, L_out_pad, W, L_x, vmem = geom(TL)
    while TL > 128 and vmem > (24 << 20):        # headroom under v7x scoped 32 MiB
        TL = max(128, (TL // 2) // 128 * 128)
        n_lt, L_out_pad, W, L_x, vmem = geom(TL)

    # --- BN(eval) folding + operand packing (tiny one-time JAX glue) ---------
    inv = gamma / jnp.sqrt(running_var + eps)                      # (C_out,)
    w_folded = weight.astype(jnp.float32) * inv[:, None, None]     # fold BN scale
    w2d = jnp.transpose(w_folded, (0, 2, 1))                       # (C_out, K, C_in)
    w2d = jnp.pad(w2d, ((0, 0), (0, 0), (0, C_in_pad - C_in)))
    w2d = w2d.reshape(C_out, KC).astype(mxu_dtype)                 # col = k*C_in_pad + ci
    bias = (beta - running_mean * inv).reshape(C_out, 1).astype(jnp.float32)

    # Halo + channel padding + bf16 cast, fused into one pad (O(x) HBM traffic):
    xp = jnp.pad(x.astype(mxu_dtype),
                 ((0, 0), (0, C_in_pad - C_in), (padding, L_x - padding - L)))
    # Static per-tile windows (with (K-1)*dilation halo) so that all in-kernel
    # indexing is static and each tile DMAs only its own window.
    # TODO(synk): for very large inputs, replace this wrapper-side window
    #             materialization with in-kernel dynamic-offset tap reads.
    wins = [xp[:, :, t * TL * stride: t * TL * stride + W] for t in range(n_lt)]
    xw = jnp.stack(wins, axis=1)                 # (N, n_lt, C_in_pad, W)

    kernel = _make_kernel(C_in_pad, K, TL, stride, dilation)

    out = pl.pallas_call(
        kernel,
        out_shape=jax.ShapeDtypeStruct((N, C_out, L_out_pad), jnp.float32),
        grid=(N, n_lt),
        in_specs=[
            pl.BlockSpec((None, None, C_in_pad, W), lambda n, t: (n, t, 0, 0)),
            pl.BlockSpec((C_out, KC), lambda n, t: (0, 0)),
            pl.BlockSpec((C_out, 1), lambda n, t: (0, 0)),
        ],
        out_specs=pl.BlockSpec((None, C_out, TL), lambda n, t: (n, 0, t)),
        scratch_shapes=[pltpu.VMEM((KC, TL), mxu_dtype)],
        compiler_params=pltpu.CompilerParams(
            dimension_semantics=("parallel", "parallel"),
            vmem_limit_bytes=32 * 1024 * 1024),
    )(xw, w2d, bias)

    if L_out_pad != L_out:
        out = out[:, :, :L_out]                  # strip lane padding (cheap)
    return out


def _reference(x, weight, gamma, beta, running_mean, running_var,
               *, stride, padding, dilation, eps=1e-5):
    y = lax.conv_general_dilated(
        x, weight,
        window_strides=(stride,),
        padding=[(padding, padding)],
        rhs_dilation=(dilation,),
        dimension_numbers=("NCH", "OIH", "NCH"),
    )
    inv = gamma / jnp.sqrt(running_var + eps)
    y = y * inv[None, :, None] + (beta - running_mean * inv)[None, :, None]
    return jnp.maximum(y, 0.0)


if __name__ == "__main__":
    # Module config: BasicConv1D(in_planes=4, out_planes=8, kernel_size=3,
    #                            stride=1, padding=1, relu=True, bn=True, bias=False)
    N, C_in, L = 2, 4, 16
    C_out, K = 8, 3

    key = jax.random.PRNGKey(0)
    kx, kw, kg, kb, km, kv = jax.random.split(key, 6)
    x = jax.random.normal(kx, (N, C_in, L), dtype=jnp.float32)
    weight = jax.random.normal(kw, (C_out, C_in, K), dtype=jnp.float32) * 0.1
    gamma = 1.0 + 0.1 * jax.random.normal(kg, (C_out,), dtype=jnp.float32)
    beta = 0.1 * jax.random.normal(kb, (C_out,), dtype=jnp.float32)
    running_mean = 0.1 * jax.random.normal(km, (C_out,), dtype=jnp.float32)
    running_var = jnp.abs(jax.random.normal(kv, (C_out,), dtype=jnp.float32)) + 0.5

    configs = [
        dict(stride=1, padding=1, dilation=1),   # the module's spec config
        dict(stride=1, padding=2, dilation=2),   # same code path, different offsets
    ]
    for cfg in configs:
        out = basic_conv1d(x, weight, gamma, beta, running_mean, running_var, **cfg)
        out = jax.block_until_ready(out)
        ref = _reference(x, weight, gamma, beta, running_mean, running_var, **cfg)
        L_out = (L + 2 * cfg["padding"] - cfg["dilation"] * (K - 1) - 1) // cfg["stride"] + 1
        assert out.shape == (N, C_out, L_out), (out.shape, (N, C_out, L_out))
        # bf16 MXU operands (f32 accumulate): tolerance loosened vs pure-f32 reference.
        assert jnp.allclose(out, ref, atol=5e-2, rtol=5e-2), f"mismatch vs reference for {cfg}"

    print("KERNEL_OK")
</pallas_src>

<mosaic_0001>
module attributes {stable_mosaic.version = 11 : i64} {
  func.func @kernel(%arg0: i32, %arg1: i32, %arg2: memref<1x1x16x130xbf16, #tpu.memory_space<vmem>>, %arg3: memref<8x48xbf16, #tpu.memory_space<vmem>>, %arg4: memref<8x1xf32, #tpu.memory_space<vmem>>, %arg5: memref<1x8x128xf32, #tpu.memory_space<vmem>>, %arg6: memref<48x128xbf16, #tpu.memory_space<vmem>>) attributes {dimension_semantics = [#tpu.dimension_semantics<parallel>, #tpu.dimension_semantics<parallel>], iteration_bounds = array<i64: 2, 1>, scalar_prefetch = 0 : i64, scratch_operands = 1 : i64, tpu.core_type = #tpu.core_type<tc>, window_params = [{transform_indices = @transform_0, window_bounds = array<i64: 1, 1, 16, 130>}, {pipeline_mode = #tpu.pipeline_mode<synchronous>, transform_indices = @transform_1, window_bounds = array<i64: 8, 48>}, {pipeline_mode = #tpu.pipeline_mode<synchronous>, transform_indices = @transform_2, window_bounds = array<i64: 8, 1>}, {transform_indices = @transform_3, window_bounds = array<i64: 1, 8, 128>}]} {
    %c0 = arith.constant 0 : index
    %c0_0 = arith.constant 0 : index
    %c0_1 = arith.constant 0 : index
    %c0_2 = arith.constant 0 : index
    %0 = vector.load %arg2[%c0, %c0_0, %c0_1, %c0_2] : memref<1x1x16x130xbf16, #tpu.memory_space<vmem>>, vector<1x1x16x128xbf16>
    %1 = vector.shape_cast %0 : vector<1x1x16x128xbf16> to vector<16x128xbf16>
    %c0_3 = arith.constant 0 : index
    %c0_4 = arith.constant 0 : index
    %2 = vector.load %arg6[%c0_3, %c0_4] : memref<48x128xbf16, #tpu.memory_space<vmem>>, vector<16x128xbf16>
    tpu.vector_store %arg6[%c0_3, %c0_4], %1 {strides = array<i32>} : memref<48x128xbf16, #tpu.memory_space<vmem>>, vector<16x128xbf16>,
    %c0_5 = arith.constant 0 : index
    %c0_6 = arith.constant 0 : index
    %c0_7 = arith.constant 0 : index
    %c1 = arith.constant 1 : index
    %3 = vector.load %arg2[%c0_5, %c0_6, %c0_7, %c1] : memref<1x1x16x130xbf16, #tpu.memory_space<vmem>>, vector<1x1x16x128xbf16>
    %4 = vector.shape_cast %3 : vector<1x1x16x128xbf16> to vector<16x128xbf16>
    %c16 = arith.constant 16 : index
    %c0_8 = arith.constant 0 : index
    %5 = vector.load %arg6[%c16, %c0_8] : memref<48x128xbf16, #tpu.memory_space<vmem>>, vector<16x128xbf16>
    tpu.vector_store %arg6[%c16, %c0_8], %4 {strides = array<i32>} : memref<48x128xbf16, #tpu.memory_space<vmem>>, vector<16x128xbf16>,
    %c0_9 = arith.constant 0 : index
    %c0_10 = arith.constant 0 : index
    %c0_11 = arith.constant 0 : index
    %c2 = arith.constant 2 : index
    %6 = vector.load %arg2[%c0_9, %c0_10, %c0_11, %c2] : memref<1x1x16x130xbf16, #tpu.memory_space<vmem>>, vector<1x1x16x128xbf16>
    %7 = vector.shape_cast %6 : vector<1x1x16x128xbf16> to vector<16x128xbf16>
    %c32 = arith.constant 32 : index
    %c0_12 = arith.constant 0 : index
    %8 = vector.load %arg6[%c32, %c0_12] : memref<48x128xbf16, #tpu.memory_space<vmem>>, vector<16x128xbf16>
    tpu.vector_store %arg6[%c32, %c0_12], %7 {strides = array<i32>} : memref<48x128xbf16, #tpu.memory_space<vmem>>, vector<16x128xbf16>,
    %c0_13 = arith.constant 0 : index
    %c0_14 = arith.constant 0 : index
    %9 = vector.load %arg3[%c0_13, %c0_14] : memref<8x48xbf16, #tpu.memory_space<vmem>>, vector<8x48xbf16>
    %c0_15 = arith.constant 0 : index
    %c0_16 = arith.constant 0 : index
    %10 = vector.load %arg6[%c0_15, %c0_16] : memref<48x128xbf16, #tpu.memory_space<vmem>>, vector<48x128xbf16>
    %cst = arith.constant dense<0.000000e+00> : vector<8x128xf32>
    %11 = tpu.matmul %9, %10, %cst {dimension_numbers = #tpu.dot_dimension_numbers<[1], [0], [0], [1], [0, 0, 1, 1], [], []>} : vector<8x48xbf16>, vector<48x128xbf16>, vector<8x128xf32> -> vector<8x128xf32>
    %c0_17 = arith.constant 0 : index
    %c0_18 = arith.constant 0 : index
    %12 = vector.load %arg4[%c0_17, %c0_18] : memref<8x1xf32, #tpu.memory_space<vmem>>, vector<8x1xf32>
    %13 = vector.broadcast %12 : vector<8x1xf32> to vector<8x128xf32>
    %14 = arith.addf %11, %13 : vector<8x128xf32>
    %cst_19 = arith.constant 0.000000e+00 : f32
    %15 = vector.broadcast %cst_19 : f32 to vector<8x128xf32>
    %16 = arith.maximumf %14, %15 : vector<8x128xf32>
    %c0_20 = arith.constant 0 : index
    %c0_21 = arith.constant 0 : index
    %c0_22 = arith.constant 0 : index
    %17 = vector.load %arg5[%c0_20, %c0_21, %c0_22] : memref<1x8x128xf32, #tpu.memory_space<vmem>>, vector<1x8x128xf32>
    %18 = vector.shape_cast %17 : vector<1x8x128xf32> to vector<8x128xf32>
    %19 = vector.shape_cast %16 : vector<8x128xf32> to vector<1x8x128xf32>
    tpu.vector_store %arg5[%c0_20, %c0_21, %c0_22], %19 {strides = array<i32>} : memref<1x8x128xf32, #tpu.memory_space<vmem>>, vector<1x8x128xf32>,
    return
  }
  func.func @transform_0(%arg0: i32, %arg1: i32) -> (i32, i32, i32, i32) {
    %c0_i32 = arith.constant 0 : i32
    %c0_i32_0 = arith.constant 0 : i32
    %c0_i32_1 = arith.constant 0 : i32
    return %arg0, %arg1, %c0_i32, %c0_i32_0 : i32, i32, i32, i32
  }
  func.func @transform_1(%arg0: i32, %arg1: i32) -> (i32, i32) {
    %c0_i32 = arith.constant 0 : i32
    %c0_i32_0 = arith.constant 0 : i32
    %c0_i32_1 = arith.constant 0 : i32
    return %c0_i32, %c0_i32_0 : i32, i32
  }
  func.func @transform_2(%arg0: i32, %arg1: i32) -> (i32, i32) {
    %c0_i32 = arith.constant 0 : i32
    %c0_i32_0 = arith.constant 0 : i32
    %c0_i32_1 = arith.constant 0 : i32
    return %c0_i32, %c0_i32_0 : i32, i32
  }
  func.func @transform_3(%arg0: i32, %arg1: i32) -> (i32, i32, i32) {
    %c0_i32 = arith.constant 0 : i32
    %c0_i32_0 = arith.constant 0 : i32
    return %arg0, %c0_i32, %arg1 : i32, i32, i32
  }
}

</mosaic_0001>

<bundles_post_ra>
// kernel: basic_conv1d.1
= control target key start
LH: loop header
LB: loop body
LE: loop exit
PB: predicated region body
PF: predicated region fallthrough
CT: control target
= control target key end

     0   :  { %8 = vsyncpa [#allocation4], 0  ;;  %s713_s0 = inlined_call_operand.vmem [shape: bf16[2,1,16,130], index: 0, kind: input, shape index: {}]   ;;  %s714_s1 = inlined_call_operand.vmem [shape: bf16[8,48], index: 1, kind: input, shape index: {}]   ;;  %s715_s2 = inlined_call_operand.vmem [shape: f32[8,1], index: 2, kind: input, shape index: {}]   ;;  %s716_s3 = inlined_call_operand.hbm [shape: f32[2,8,128], index: 3, kind: output, shape index: {}]  }
   0x1   :  { %10 = vsyncpa [#allocation4 + $0x1], 0  ;;  %s595_s12 = smov 0   ;;  %s597_s13 = smov 0  }
   0x2   :  { %s599_s14 = smov 0   ;;  %s601_s15 = smov 0  }
   0x3   :  { %s603_s16 = smov 0   ;;  %s605_s17 = smov 0  }
   0x4 LB: > { %s391_s18 = sadd.s32 4294967295, %s567_s17   ;;  %s392_s19 = sadd.s32 4294967294, %s567_s17   ;;  %s567_s17 = sphi %s605_s17, %s16_s17   ;;  %s563_s16 = sphi %s603_s16, %s723_s16   ;;  %s559_s15 = sphi %s601_s15, %s722_s15   ;;  %s555_s14 = sphi %s599_s14, %s721_s14   ;;  %s551_s13 = sphi %s597_s13, %s720_s13   ;;  %s547_s12 = sphi %s595_s12, %s719_s12  }
   0x5   : > { %s28_s20 = sadd.s32 1, %s563_s16  ;;  %s107_s21 = sadd.s32 1, %s555_s14 }
   0x6   : > { %p30_p0 = scmp.ge.s32.totalorder %s28_s20, 2  ;;  %p117_p1 = scmp.ne.s32.totalorder %s555_s14, %s551_s13 }
   0x7   : > { %p118_p2 = scmp.eq.s32.totalorder %s391_s18, 1  ;;  %p123_p3 = scmp.ne.s32.totalorder %s551_s13, %s547_s12 }
   0x8   : > { %s725_s20 = smov (%p30_p0, %s28_s20), 0  ;;  %p124_p5 = scmp.eq.s32.totalorder %s392_s19, 1 }
   0x9   : > { %p635_p4 = por %p118_p2, %p117_p1  ;;  %s102_s23 = ssub.s32 %s563_s16, %s725_s20 }
   0xa   : > { %p395_p6 = scmp.ge.s32.totalorder %s567_s17, 1  ;;  %p105_p7 = scmp.eq.s32.totalorder %s102_s23, 0 }
   0xb   : > { %p642_p8 = por %p124_p5, %p123_p3  ;;  %p160_p9 = scmp.lt.s32.totalorder %s567_s17, 3 }
   0xc   : > { %s648_s25 = scalar_select %p105_p7, %s555_s14, %s107_s21  }
   0xd   : > { %p161_p10 = pnand %p395_p6, %p160_p9 }
   0xe   : > { %p188_p11 = scmp.lt.s32.totalorder (!%p161_p10), %s559_s15, 1  ;;  %v569_v0 = vmov (!%p161_p10), 0.0   ;;  %vm570_vm0 = vmmov (!%p161_p10), 0   ;;  %s571_s4 = smov (!%p161_p10), 126   ;;  %v573_v4 = vmov (!%p161_p10), 0   ;;  %v247_v5 = vld [vmem:[%s715_s2] sm:$0xff] (!%p161_p10) }
   0xf   : > { %164 = sbr.rel (%p161_p10) target bundleno = 384 (0x180), region = 32  ;;  %414 = vmatprep.subr.bf16.mxu0 (!%p161_p10), %v569_v0  ;;  %420 = vmatprep.mubr.msk.bf16.mxu0 (!%p161_p10), %vm570_vm0, %v569_v0  ;;  %s572_s5 = smov (!%p161_p10), 127   ;;  %vm221_vm1 = vcmask (!%p161_p10), 1039360   ;;  %vm239_vm2 = vcmask (!%p161_p10), 1031168   ;;  %v243_v12 = vld [vmem:[%s714_s1] sm:$0xf] (!%p161_p10) }
  0x10   : > { %484 = vset.pattern.permute.xlu0 (!%p161_p10), %v573_v4  ;;  %vm253_vm3 = vcmask (!%p161_p10), 392192   ;;  %s185_s10 = sand.u32 (!%p161_p10), 1, %s551_s13   ;;  %s406_s18 = sshll.u32 (!%p161_p10), %s559_s15, 7 }
  0x11   : > { %s396_s11 = sshll.u32 (!%p161_p10), %s185_s10, 3  ;;  %s300_s28 = scalar_lea.sflag (!%p161_p10), [#allocation4], %s185_s10 }
  0x12   : > { %s187_s19 = scalar_lea.vmem (!%p161_p10), [#allocation3], %s396_s11  ;;  %s574_s29 = smov (!%p161_p10), [#allocation3]  }
  0x13   : > { %s314_s21 = sshll.u32 (!%p161_p10), %s187_s19, 4  ;;  %s668_s21 = int_to_ptr.vmem [resolvable:$true] %s314_s21 }
  0x16   : > { %s189_s26 = scalar_select %p188_p11, %s559_s15, 1 }
  0x17   : > { %s489_s15 = scalar_lea.vmem %s668_s21, 128 }
  0x18   : > { %s409_s27 = sshll.u32 %s189_s26, 4  ;;  %p490_p12 = scmp.ne.s32.totalorder %s668_s21, %s489_s15 }
  0x19   : > { %s196_s30 = scalar_lea.vmem %s713_s0, %s409_s27  ;;  %s666_s27 = scalar_lea.hbm %s716_s3, %s406_s18 }
  0x1a   : > { %v485_v1 = vld [vmem:[%s196_s30] ss:$8 sps:$4 sm:$0xff]   ;;  %v487_v2 = vld [vmem:[%s196_s30 + $0x4] ss:$8 sps:$4 sm:$0xff]   ;;  %p491_p13 = pnand %p490_p12, %p635_p4 }
  0x1b   : > { %235 = vrot.lane.b32.xlu1 %v485_v1, %s571_s4  ;;  %217 = vrot.lane.b32.xlu0 %v485_v1, %s572_s5  ;;  %v488_v3 = vld [vmem:[%s196_s30] ss:$8 sps:$4 sm:$0xff]   ;;  %s493_s30 = sshll.u32 %s574_s29, 4  ;;  %s494_s30 = int_to_ptr.vmem [resolvable:$false] %s493_s30 }
  0x1c   : > { %415 = vmatpush3.bf16.msra.mxu0 %v488_v3  ;;  %p492_p0 = pneg %p491_p13  ;;  %p496_p1 = scmp.lt.s32.totalorder %s668_s21, %s494_s30 }
  0x1d   : > { %416 = vmatprep.subr.bf16.mxu0 %v569_v0 }
  0x1f   : > { %237 = vrot.lane.b32.xlu1 %v487_v2, %s571_s4  ;;  %219 = vrot.lane.b32.xlu0 %v487_v2, %s572_s5  ;;  %s495_s4 = scalar_lea.vmem %s494_s30, 256 }
  0x20   : > { %p497_p2 = scmp.lt.s32.totalorder %s495_s4, %s489_s15 }
  0x22   : > { %p498_p3 = por %p497_p2, %p496_p1 }
  0x23   : > { %250 = vperm.xlu0 %484, %v247_v5  }
  0x24   : > { %p499_p5 = pnand %p498_p3, %p492_p0 }
  0x8d   : > { %v236_v6 = vpop.permute.xlu1 %235  ;;  %v218_v7 = vpop.permute.xlu0 %217 }
  0x91   : > { %v220_v8 = vpop.permute.xlu0 %219  ;;  %v238_v10 = vpop.permute.xlu1 %237 }
  0x92   : > { %v222_v9 = vsel %vm221_vm1, %v218_v7, %v220_v8  ;;  %v240_v11 = vsel %vm239_vm2, %v236_v6, %v238_v10 }
  0x93   : > { %417 = vmatpush3.bf16.msra.mxu0 %v222_v9 }
  0x94   : > { %418 = vmatprep.subr.bf16.mxu0 %v569_v0 }
  0x97   : > { %419 = vmatpush3.bf16.msra.mxu0 %v240_v11 }
  0x9a   : > { %421 = vmatmul.mubr.msk.bf16.vlgmr.msra.gmra.mrb[0].mxu0 %vm253_vm3, %v243_v12 }
  0xa2   : > { %v251_v13 = vpop.permute.xlu0 %250 }
 0x16d   : > { %v291_v14 = vpop.f32.mrb[0].mxu0 }
 0x16e   : > { %v292_v15 = vadd.f32 %v291_v14, %v251_v13  ;;  %v422_v16 = vpop.f32.mrb[1].mxu0 }
 0x16f   : > { %v294_v17 = vpop.f32.mrb[2].mxu0 }
 0x170   : > { %v297_v18 = vmax.f32 %v292_v15, 0.0  ;;  %v423_v19 = vpop.f32.mrb[3].mxu0 }
 0x172   : > { %298 = vst [vmem:[%s187_s19] sm:$0xff] %v297_v18 }
 0x173   : > { %502 = shalt.err (!%p499_p5)
}
 0x174   : > { %s503_s5 = scalar_lea.hbm %s666_s27, 128  ;;  %s507_s8 = scalar_lea.hbm %s716_s3, 256 }
 0x175   : > { %p504_p6 = scmp.ne.s32.totalorder %s666_s27, %s503_s5  ;;  %p508_p10 = scmp.lt.u32.totalorder %s666_s27, %s716_s3 }
 0x176   : > { %p509_p11 = scmp.lt.u32.totalorder %s507_s8, %s503_s5  ;;  %p511_p13 = scmp.lt.u32.totalorder %s503_s5, %s666_s27 }
 0x177   : > { %p505_p7 = pnand %p504_p6, %p635_p4 }
 0x178   : > { %p510_p12 = por %p509_p11, %p508_p10 }
 0x179   : > { %p506_p9 = pneg %p505_p7 }
 0x17a   : > { %p512_p0 = por %p511_p13, %p510_p12 }
 0x17c   : > { %p513_p1 = pnand %p512_p0, %p506_p9 }
 0x17e   : > { %516 = shalt.err (!%p513_p1)
}
 0x17f   : > { %424 = dma.vmem_to_hbm [thread:$0]  (%p635_p4), %s668_s21, 128, %s666_s27, %s300_s28  }
 0x180 PF: > { %p430_p2 = scmp.ge.s32.totalorder %s567_s17, 2  ;;  %s326_s11 = sand.u32 1, %s547_s12  }
 0x181   : > { %s327_s18 = scalar_lea.sflag [#allocation4], %s326_s11 }
 0x182   : > { %p427_p3 = pnand %p430_p2, %p642_p8 }
 0x184   : > { %542 = dma.done.wait (!%p427_p3), %s327_s18, 128  }
 0x185   : > { %544 = vsyncadd (!%p427_p3), %s327_s18, 4294967168  ;;  %s16_s17 = sadd.s32 1, %s567_s17   ;;  %s719_s12 = smov %s551_s13 }
 0x186   : > { %p13_p5 = scmp.ge.s32.totalorder %s16_s17, 4   ;;  %s720_s13 = smov %s555_s14 }
 0x187   : > { %s721_s14 = smov %s648_s25  ;;  %s722_s15 = smov %s563_s16 }
 0x188   : > { %s723_s16 = smov %s725_s20  ;;  %15 = sbr.rel (!%p13_p5) target bundleno = 4 (0x4), region = 67 }
 0x18f   :  { %332 = vsyncpa [#allocation4], 1 }
 0x190   :  { %334 = vsyncpa [#allocation4 + $0x1], 1 }

</bundles_post_ra>
